<compile_context>
chip_gen: v7x
topology: tpu7x:2x2x1
jax: 0.10.0
libtpu: 0.0.40
codegen_flags: <defaults>
</compile_context>

<pallas_src>
import functools

import jax
import jax.numpy as jnp
from jax import lax
from jax.experimental import pallas as pl
from jax.experimental.pallas import tpu as pltpu

BN_EPS = 1e-5
LEAKY_SLOPE = 0.01  # PyTorch nn.LeakyReLU default

# bf16 MXU operands / bf16 input streams; accumulation stays f32.
MATMUL_DTYPE = jnp.bfloat16
INPUT_DTYPE = jnp.bfloat16


# ---------------------------------------------------------------- small helpers
def _dot(a, w):
    # a is f32 (elementwise path); cast the MXU operand only.
    return jnp.dot(a.astype(MATMUL_DTYPE), w, preferred_element_type=jnp.float32)


def _relu(y):
    return jnp.maximum(y, 0.0)


def _leaky_relu(y):
    return jnp.where(y >= 0.0, y, LEAKY_SLOPE * y)


def _round_up(x, m):
    return ((x + m - 1) // m) * m


# ---------------------------------------------------------------- fused kernel
def _fused_forward_kernel(
    wt_ref, mut_ref, swt_ref, smut_ref,
    w_e1, w_e2, w_e3, w_s0, w_s1, w_h_top, w_h_bot,
    bias_ref,                       # (8, H) f32: 6 biases, w_o row, b_o row
    o_ref,
):
    f32 = jnp.float32
    b_e1 = bias_ref[0:1, :]
    b_e2 = bias_ref[1:2, :]
    b_e3 = bias_ref[2:3, :]
    b_s0 = bias_ref[3:4, :]
    b_s1 = bias_ref[4:5, :]
    b_h = bias_ref[5:6, :]
    w_o = bias_ref[6:7, :]          # final (H -> 1) weight as a lane row
    b_o = bias_ref[7, 0]            # final output bias (scalar)

    # ---- emb branch (BasicMLP, ReLU blocks; eval BNs pre-folded into next W/b)
    xe = mut_ref[...].astype(f32) - wt_ref[...].astype(f32)
    e = _relu(_dot(xe, w_e1[...]) + b_e1)
    e = _relu(_dot(e, w_e2[...]) + b_e2)
    emb = _dot(e, w_e3[...]) + b_e3

    # ---- seq branch (Siamese diff + two ReLU blocks; BNs pre-folded forward)
    xs = smut_ref[...].astype(f32) - swt_ref[...].astype(f32)
    s = _relu(_dot(xs, w_s0[...]) + b_s0)
    seq = _relu(_dot(s, w_s1[...]) + b_s1)

    # ---- head: concat([emb, seq]) @ Wh == emb @ Wh_top + seq @ Wh_bot (no concat)
    h = _leaky_relu(_dot(emb, w_h_top[...]) + _dot(seq, w_h_bot[...]) + b_h)

    # final (H -> 1): VPU multiply + lane reduce instead of an N=1 MXU matmul
    o_ref[...] = (jnp.sum(h * w_o, axis=-1, keepdims=True) + b_o).astype(o_ref.dtype)


# ---------------------------------------------------------------- pallas wrapper
_WEIGHT_ORDER = (
    "w_e1", "w_e2", "w_e3", "w_s0", "w_s1", "w_h_top", "w_h_bot", "bias_pack",
)


def _full_spec(shape):
    # Whole-array VMEM-resident block; constant index_map => fetched once.
    return pl.BlockSpec(shape, lambda i, _n=len(shape): (0,) * _n)


def mixed_model_forward(fp, wt, mut, seq_wt, seq_mut, *, batch_tile=512):
    B, D = wt.shape
    H = fp["w_e2"].shape[0]

    # bf16 input streams (no-op if the caller already supplies bf16).
    inputs = [a if a.dtype == INPUT_DTYPE else a.astype(INPUT_DTYPE)
              for a in (wt, mut, seq_wt, seq_mut)]

    # Batch tile: large enough to amortize per-grid-step overhead (~0.35us),
    # capped so the grid has >= 2 steps when the batch allows it (v7x megacore).
    if B >= 16:
        TB = min(batch_tile, _round_up(pl.cdiv(B, 2), 8))
    else:
        TB = _round_up(B, 8)
    B_pad = _round_up(B, TB)
    if B_pad != B:
        pad = ((0, B_pad - B), (0, 0))
        inputs = [jnp.pad(a, pad) for a in inputs]
    grid = (B_pad // TB,)

    data_spec = pl.BlockSpec((TB, D), lambda i: (i, 0))
    out_spec = pl.BlockSpec((TB, 1), lambda i: (i, 0))

    weights = [fp[name] for name in _WEIGHT_ORDER]
    weight_specs = [_full_spec(tuple(w.shape)) for w in weights]

    # Advisory cost estimate so XLA can overlap this custom call with neighbours.
    flops = 2 * B_pad * (2 * D * H + 5 * H * H + H)
    bytes_accessed = (
        4 * B_pad * D * jnp.dtype(INPUT_DTYPE).itemsize
        + sum(int(w.size) * jnp.dtype(w.dtype).itemsize for w in weights)
        + B_pad * 4
    )

    out = pl.pallas_call(
        _fused_forward_kernel,
        out_shape=jax.ShapeDtypeStruct((B_pad, 1), jnp.float32),
        grid=grid,
        in_specs=[data_spec] * 4 + weight_specs,
        out_specs=out_spec,
        compiler_params=pltpu.CompilerParams(
            dimension_semantics=("parallel",),   # batch tiles independent (v7x: 2 TCs)
        ),
        cost_estimate=pl.CostEstimate(
            flops=int(flops), transcendentals=0, bytes_accessed=int(bytes_accessed)),
    )(*inputs, *weights)
    return out[:B]


# ---------------------------------------------------------------- parameters
def _init_linear(key, fan_in, fan_out):
    # PyTorch nn.Linear default: U(-1/sqrt(fan_in), 1/sqrt(fan_in)) for weight and bias.
    kw, kb = jax.random.split(key)
    bound = 1.0 / jnp.sqrt(jnp.float32(fan_in))
    w = jax.random.uniform(kw, (fan_in, fan_out), jnp.float32, -bound, bound)
    b = jax.random.uniform(kb, (1, fan_out), jnp.float32, -bound, bound)
    return w, b


def _init_bn(h):
    # PyTorch BatchNorm1d defaults: gamma=1, beta=0, running_mean=0, running_var=1.
    return dict(
        gamma=jnp.ones((h,), jnp.float32),
        beta=jnp.zeros((h,), jnp.float32),
        mean=jnp.zeros((h,), jnp.float32),
        var=jnp.ones((h,), jnp.float32),
    )


def init_raw_params(key, in_shape, hidden_dim):
    ks = jax.random.split(key, 8)
    p = {}
    # emb_reg (BasicMLP, act=ReLU)
    p["emb_in_w"], p["emb_in_b"] = _init_linear(ks[0], in_shape, hidden_dim)
    p["emb_in_bn"] = _init_bn(hidden_dim)
    p["emb_hid_w"], p["emb_hid_b"] = _init_linear(ks[1], hidden_dim, hidden_dim)
    p["emb_hid_bn"] = _init_bn(hidden_dim)
    p["emb_out_w"], p["emb_out_b"] = _init_linear(ks[2], hidden_dim, hidden_dim)
    # seq_reg (SiameseSequenceReg, act=ReLU)
    p["seq0_w"], p["seq0_b"] = _init_linear(ks[3], in_shape, hidden_dim)
    p["seq0_bn"] = _init_bn(hidden_dim)
    p["seq1_w"], p["seq1_b"] = _init_linear(ks[4], hidden_dim, hidden_dim)
    p["seq1_bn"] = _init_bn(hidden_dim)
    # head: block(2H, H, LeakyReLU) ; Linear(H, 1)
    p["head_w"], p["head_b"] = _init_linear(ks[5], 2 * hidden_dim, hidden_dim)
    p["head_bn"] = _init_bn(hidden_dim)
    p["head_out_w"], p["head_out_b"] = _init_linear(ks[6], hidden_dim, 1)
    return p


def fold_params(p, hidden_dim):
    """Fold every eval-mode BatchNorm into the Linear layer that consumes it.

    BN(a) @ W + b = a @ (diag(scale) @ W) + (shift @ W + b), with
    scale = gamma * rsqrt(var + eps), shift = beta - mean * scale.
    Also packs the 6 hidden biases + final output weight row + output bias into
    one (8, H) f32 block, and casts the 7 weight matrices to bf16 (MXU operand
    dtype); f32 accumulation happens inside the kernel.
    """
    def bn_affine(bn):
        scale = bn["gamma"] * lax.rsqrt(bn["var"] + BN_EPS)
        shift = bn["beta"] - bn["mean"] * scale
        return scale, shift

    s1, t1 = bn_affine(p["emb_in_bn"])
    s2, t2 = bn_affine(p["emb_hid_bn"])
    ss0, ts0 = bn_affine(p["seq0_bn"])
    ss1, ts1 = bn_affine(p["seq1_bn"])
    sh, th = bn_affine(p["head_bn"])

    H = hidden_dim
    w_h_top = p["head_w"][:H]   # consumes emb (plain Linear output, no BN)
    w_h_bot = p["head_w"][H:]   # consumes seq (BN_s1 output -> fold here)

    b_e1 = p["emb_in_b"]
    b_e2 = p["emb_hid_b"] + t1 @ p["emb_hid_w"]
    b_e3 = p["emb_out_b"] + t2 @ p["emb_out_w"]
    b_s0 = p["seq0_b"]
    b_s1 = p["seq1_b"] + ts0 @ p["seq1_w"]
    b_h = p["head_b"] + ts1 @ w_h_bot
    w_o = (sh[:, None] * p["head_out_w"]).reshape(1, H)          # (1, H) lane row
    b_o = (p["head_out_b"] + th @ p["head_out_w"]).reshape(1, 1)  # scalar

    bias_pack = jnp.concatenate(
        [b_e1, b_e2, b_e3, b_s0, b_s1, b_h, w_o, jnp.full((1, H), b_o[0, 0])],
        axis=0,
    ).astype(jnp.float32)                                         # (8, H)

    fp = {
        "w_e1": p["emb_in_w"],
        "w_e2": s1[:, None] * p["emb_hid_w"],
        "w_e3": s2[:, None] * p["emb_out_w"],
        "w_s0": p["seq0_w"],
        "w_s1": ss0[:, None] * p["seq1_w"],
        "w_h_top": w_h_top,
        "w_h_bot": ss1[:, None] * w_h_bot,
        "bias_pack": bias_pack,
    }
    for k in list(fp):
        if k.startswith("w_"):
            fp[k] = fp[k].astype(MATMUL_DTYPE)
    return fp


# ---------------------------------------------------------------- pure-JAX reference
def _reference_forward(p, wt, mut, seq_wt, seq_mut):
    def bn(y, b):
        scale = b["gamma"] * lax.rsqrt(b["var"] + BN_EPS)
        return scale * (y - b["mean"]) + b["beta"]

    x = mut - wt
    e = bn(jnp.maximum(x @ p["emb_in_w"] + p["emb_in_b"], 0.0), p["emb_in_bn"])
    e = bn(jnp.maximum(e @ p["emb_hid_w"] + p["emb_hid_b"], 0.0), p["emb_hid_bn"])
    emb = e @ p["emb_out_w"] + p["emb_out_b"]

    xs = seq_mut - seq_wt
    s = bn(jnp.maximum(xs @ p["seq0_w"] + p["seq0_b"], 0.0), p["seq0_bn"])
    seq = bn(jnp.maximum(s @ p["seq1_w"] + p["seq1_b"], 0.0), p["seq1_bn"])

    xc = jnp.concatenate([emb, seq], axis=1)
    yh = xc @ p["head_w"] + p["head_b"]
    h = bn(jnp.where(yh >= 0.0, yh, LEAKY_SLOPE * yh), p["head_bn"])
    return h @ p["head_out_w"] + p["head_out_b"]


# ---------------------------------------------------------------- main
if __name__ == "__main__":
    # Small shapes consistent with the module (real defaults 768 / 256) but
    # lane-aligned (multiples of 128).  B=24 exercises batch padding (->32) and
    # a 2-step grid (two batch tiles of 16).
    B, D_IN, HIDDEN = 24, 256, 128

    key = jax.random.PRNGKey(0)
    k_par, k_wt, k_mut, k_swt, k_smut = jax.random.split(key, 5)

    raw = init_raw_params(k_par, D_IN, HIDDEN)
    folded = fold_params(raw, HIDDEN)

    wt_f = jax.random.normal(k_wt, (B, D_IN), jnp.float32)
    mut_f = jax.random.normal(k_mut, (B, D_IN), jnp.float32)
    swt_f = jax.random.normal(k_swt, (B, D_IN), jnp.float32)
    smut_f = jax.random.normal(k_smut, (B, D_IN), jnp.float32)

    # Production data layout: inputs stored/streamed as bf16.
    wt, mut, seq_wt, seq_mut = (a.astype(INPUT_DTYPE) for a in (wt_f, mut_f, swt_f, smut_f))

    fwd = jax.jit(functools.partial(mixed_model_forward, batch_tile=512))
    out = fwd(folded, wt, mut, seq_wt, seq_mut)
    out = jax.block_until_ready(out)

    assert out.shape == (B, 1) and out.dtype == jnp.float32
    assert bool(jnp.all(jnp.isfinite(out)))

    # Check the fused/folded bf16 kernel against straightforward f32 math on the
    # same (bf16-quantized) inputs; tolerance loosened for bf16 MXU operands.
    ref_inputs = [a.astype(jnp.float32) for a in (wt, mut, seq_wt, seq_mut)]
    ref = _reference_forward(raw, *ref_inputs)
    assert bool(jnp.allclose(out, ref, rtol=5e-2, atol=5e-2)), "mismatch vs reference"

    print("KERNEL_OK")
</pallas_src>

<mosaic_0001>
module attributes {stable_mosaic.version = 11 : i64} {
  func.func @_fused_forward_kernel(%arg0: i32, %arg1: memref<16x256xbf16, #tpu.memory_space<vmem>>, %arg2: memref<16x256xbf16, #tpu.memory_space<vmem>>, %arg3: memref<16x256xbf16, #tpu.memory_space<vmem>>, %arg4: memref<16x256xbf16, #tpu.memory_space<vmem>>, %arg5: memref<256x128xbf16, #tpu.memory_space<vmem>>, %arg6: memref<128x128xbf16, #tpu.memory_space<vmem>>, %arg7: memref<128x128xbf16, #tpu.memory_space<vmem>>, %arg8: memref<256x128xbf16, #tpu.memory_space<vmem>>, %arg9: memref<128x128xbf16, #tpu.memory_space<vmem>>, %arg10: memref<128x128xbf16, #tpu.memory_space<vmem>>, %arg11: memref<128x128xbf16, #tpu.memory_space<vmem>>, %arg12: memref<8x128xf32, #tpu.memory_space<vmem>>, %arg13: memref<16x1xf32, #tpu.memory_space<vmem>>) attributes {dimension_semantics = [#tpu.dimension_semantics<parallel>], iteration_bounds = array<i64: 2>, scalar_prefetch = 0 : i64, scratch_operands = 0 : i64, tpu.core_type = #tpu.core_type<tc>, window_params = [{transform_indices = @transform_0, window_bounds = array<i64: 16, 256>}, {transform_indices = @transform_1, window_bounds = array<i64: 16, 256>}, {transform_indices = @transform_2, window_bounds = array<i64: 16, 256>}, {transform_indices = @transform_3, window_bounds = array<i64: 16, 256>}, {pipeline_mode = #tpu.pipeline_mode<synchronous>, transform_indices = @transform_4, window_bounds = array<i64: 256, 128>}, {pipeline_mode = #tpu.pipeline_mode<synchronous>, transform_indices = @transform_5, window_bounds = array<i64: 128, 128>}, {pipeline_mode = #tpu.pipeline_mode<synchronous>, transform_indices = @transform_6, window_bounds = array<i64: 128, 128>}, {pipeline_mode = #tpu.pipeline_mode<synchronous>, transform_indices = @transform_7, window_bounds = array<i64: 256, 128>}, {pipeline_mode = #tpu.pipeline_mode<synchronous>, transform_indices = @transform_8, window_bounds = array<i64: 128, 128>}, {pipeline_mode = #tpu.pipeline_mode<synchronous>, transform_indices = @transform_9, window_bounds = array<i64: 128, 128>}, {pipeline_mode = #tpu.pipeline_mode<synchronous>, transform_indices = @transform_10, window_bounds = array<i64: 128, 128>}, {pipeline_mode = #tpu.pipeline_mode<synchronous>, transform_indices = @transform_11, window_bounds = array<i64: 8, 128>}, {transform_indices = @transform_12, window_bounds = array<i64: 16, 1>}]} {
    %c0 = arith.constant 0 : index
    %c0_0 = arith.constant 0 : index
    %0 = vector.load %arg12[%c0, %c0_0] : memref<8x128xf32, #tpu.memory_space<vmem>>, vector<1x128xf32>
    %c1 = arith.constant 1 : index
    %c0_1 = arith.constant 0 : index
    %1 = vector.load %arg12[%c1, %c0_1] : memref<8x128xf32, #tpu.memory_space<vmem>>, vector<1x128xf32>
    %c2 = arith.constant 2 : index
    %c0_2 = arith.constant 0 : index
    %2 = vector.load %arg12[%c2, %c0_2] : memref<8x128xf32, #tpu.memory_space<vmem>>, vector<1x128xf32>
    %c3 = arith.constant 3 : index
    %c0_3 = arith.constant 0 : index
    %3 = vector.load %arg12[%c3, %c0_3] : memref<8x128xf32, #tpu.memory_space<vmem>>, vector<1x128xf32>
    %c4 = arith.constant 4 : index
    %c0_4 = arith.constant 0 : index
    %4 = vector.load %arg12[%c4, %c0_4] : memref<8x128xf32, #tpu.memory_space<vmem>>, vector<1x128xf32>
    %c5 = arith.constant 5 : index
    %c0_5 = arith.constant 0 : index
    %5 = vector.load %arg12[%c5, %c0_5] : memref<8x128xf32, #tpu.memory_space<vmem>>, vector<1x128xf32>
    %c6 = arith.constant 6 : index
    %c0_6 = arith.constant 0 : index
    %6 = vector.load %arg12[%c6, %c0_6] : memref<8x128xf32, #tpu.memory_space<vmem>>, vector<1x128xf32>
    %c7 = arith.constant 7 : index
    %c0_7 = arith.constant 0 : index
    %7 = vector.load %arg12[%c7, %c0_7] : memref<8x128xf32, #tpu.memory_space<vmem>>, vector<1x1xf32>
    %8 = vector.extract %7[0, 0] : f32 from vector<1x1xf32>
    %c0_8 = arith.constant 0 : index
    %c0_9 = arith.constant 0 : index
    %9 = vector.load %arg2[%c0_8, %c0_9] : memref<16x256xbf16, #tpu.memory_space<vmem>>, vector<16x256xbf16>
    %10 = arith.extf %9 : vector<16x256xbf16> to vector<16x256xf32>
    %c0_10 = arith.constant 0 : index
    %c0_11 = arith.constant 0 : index
    %11 = vector.load %arg1[%c0_10, %c0_11] : memref<16x256xbf16, #tpu.memory_space<vmem>>, vector<16x256xbf16>
    %12 = arith.extf %11 : vector<16x256xbf16> to vector<16x256xf32>
    %13 = arith.subf %10, %12 : vector<16x256xf32>
    %c0_12 = arith.constant 0 : index
    %c0_13 = arith.constant 0 : index
    %14 = vector.load %arg5[%c0_12, %c0_13] : memref<256x128xbf16, #tpu.memory_space<vmem>>, vector<256x128xbf16>
    %15 = arith.truncf %13 : vector<16x256xf32> to vector<16x256xbf16>
    %cst = arith.constant dense<0.000000e+00> : vector<16x128xf32>
    %16 = tpu.matmul %15, %14, %cst {dimension_numbers = #tpu.dot_dimension_numbers<[1], [0], [0], [1], [0, 0, 1, 1], [], []>} : vector<16x256xbf16>, vector<256x128xbf16>, vector<16x128xf32> -> vector<16x128xf32>
    %17 = vector.broadcast %0 : vector<1x128xf32> to vector<16x128xf32>
    %18 = arith.addf %16, %17 : vector<16x128xf32>
    %cst_14 = arith.constant 0.000000e+00 : f32
    %19 = vector.broadcast %cst_14 : f32 to vector<16x128xf32>
    %20 = arith.maximumf %18, %19 : vector<16x128xf32>
    %c0_15 = arith.constant 0 : index
    %c0_16 = arith.constant 0 : index
    %21 = vector.load %arg6[%c0_15, %c0_16] : memref<128x128xbf16, #tpu.memory_space<vmem>>, vector<128x128xbf16>
    %22 = arith.truncf %20 : vector<16x128xf32> to vector<16x128xbf16>
    %cst_17 = arith.constant dense<0.000000e+00> : vector<16x128xf32>
    %23 = tpu.matmul %22, %21, %cst_17 {dimension_numbers = #tpu.dot_dimension_numbers<[1], [0], [0], [1], [0, 0, 1, 1], [], []>} : vector<16x128xbf16>, vector<128x128xbf16>, vector<16x128xf32> -> vector<16x128xf32>
    %24 = vector.broadcast %1 : vector<1x128xf32> to vector<16x128xf32>
    %25 = arith.addf %23, %24 : vector<16x128xf32>
    %cst_18 = arith.constant 0.000000e+00 : f32
    %26 = vector.broadcast %cst_18 : f32 to vector<16x128xf32>
    %27 = arith.maximumf %25, %26 : vector<16x128xf32>
    %c0_19 = arith.constant 0 : index
    %c0_20 = arith.constant 0 : index
    %28 = vector.load %arg7[%c0_19, %c0_20] : memref<128x128xbf16, #tpu.memory_space<vmem>>, vector<128x128xbf16>
    %29 = arith.truncf %27 : vector<16x128xf32> to vector<16x128xbf16>
    %cst_21 = arith.constant dense<0.000000e+00> : vector<16x128xf32>
    %30 = tpu.matmul %29, %28, %cst_21 {dimension_numbers = #tpu.dot_dimension_numbers<[1], [0], [0], [1], [0, 0, 1, 1], [], []>} : vector<16x128xbf16>, vector<128x128xbf16>, vector<16x128xf32> -> vector<16x128xf32>
    %31 = vector.broadcast %2 : vector<1x128xf32> to vector<16x128xf32>
    %32 = arith.addf %30, %31 : vector<16x128xf32>
    %c0_22 = arith.constant 0 : index
    %c0_23 = arith.constant 0 : index
    %33 = vector.load %arg4[%c0_22, %c0_23] : memref<16x256xbf16, #tpu.memory_space<vmem>>, vector<16x256xbf16>
    %34 = arith.extf %33 : vector<16x256xbf16> to vector<16x256xf32>
    %c0_24 = arith.constant 0 : index
    %c0_25 = arith.constant 0 : index
    %35 = vector.load %arg3[%c0_24, %c0_25] : memref<16x256xbf16, #tpu.memory_space<vmem>>, vector<16x256xbf16>
    %36 = arith.extf %35 : vector<16x256xbf16> to vector<16x256xf32>
    %37 = arith.subf %34, %36 : vector<16x256xf32>
    %c0_26 = arith.constant 0 : index
    %c0_27 = arith.constant 0 : index
    %38 = vector.load %arg8[%c0_26, %c0_27] : memref<256x128xbf16, #tpu.memory_space<vmem>>, vector<256x128xbf16>
    %39 = arith.truncf %37 : vector<16x256xf32> to vector<16x256xbf16>
    %cst_28 = arith.constant dense<0.000000e+00> : vector<16x128xf32>
    %40 = tpu.matmul %39, %38, %cst_28 {dimension_numbers = #tpu.dot_dimension_numbers<[1], [0], [0], [1], [0, 0, 1, 1], [], []>} : vector<16x256xbf16>, vector<256x128xbf16>, vector<16x128xf32> -> vector<16x128xf32>
    %41 = vector.broadcast %3 : vector<1x128xf32> to vector<16x128xf32>
    %42 = arith.addf %40, %41 : vector<16x128xf32>
    %cst_29 = arith.constant 0.000000e+00 : f32
    %43 = vector.broadcast %cst_29 : f32 to vector<16x128xf32>
    %44 = arith.maximumf %42, %43 : vector<16x128xf32>
    %c0_30 = arith.constant 0 : index
    %c0_31 = arith.constant 0 : index
    %45 = vector.load %arg9[%c0_30, %c0_31] : memref<128x128xbf16, #tpu.memory_space<vmem>>, vector<128x128xbf16>
    %46 = arith.truncf %44 : vector<16x128xf32> to vector<16x128xbf16>
    %cst_32 = arith.constant dense<0.000000e+00> : vector<16x128xf32>
    %47 = tpu.matmul %46, %45, %cst_32 {dimension_numbers = #tpu.dot_dimension_numbers<[1], [0], [0], [1], [0, 0, 1, 1], [], []>} : vector<16x128xbf16>, vector<128x128xbf16>, vector<16x128xf32> -> vector<16x128xf32>
    %48 = vector.broadcast %4 : vector<1x128xf32> to vector<16x128xf32>
    %49 = arith.addf %47, %48 : vector<16x128xf32>
    %cst_33 = arith.constant 0.000000e+00 : f32
    %50 = vector.broadcast %cst_33 : f32 to vector<16x128xf32>
    %51 = arith.maximumf %49, %50 : vector<16x128xf32>
    %c0_34 = arith.constant 0 : index
    %c0_35 = arith.constant 0 : index
    %52 = vector.load %arg10[%c0_34, %c0_35] : memref<128x128xbf16, #tpu.memory_space<vmem>>, vector<128x128xbf16>
    %53 = arith.truncf %32 : vector<16x128xf32> to vector<16x128xbf16>
    %cst_36 = arith.constant dense<0.000000e+00> : vector<16x128xf32>
    %54 = tpu.matmul %53, %52, %cst_36 {dimension_numbers = #tpu.dot_dimension_numbers<[1], [0], [0], [1], [0, 0, 1, 1], [], []>} : vector<16x128xbf16>, vector<128x128xbf16>, vector<16x128xf32> -> vector<16x128xf32>
    %c0_37 = arith.constant 0 : index
    %c0_38 = arith.constant 0 : index
    %55 = vector.load %arg11[%c0_37, %c0_38] : memref<128x128xbf16, #tpu.memory_space<vmem>>, vector<128x128xbf16>
    %56 = arith.truncf %51 : vector<16x128xf32> to vector<16x128xbf16>
    %cst_39 = arith.constant dense<0.000000e+00> : vector<16x128xf32>
    %57 = tpu.matmul %56, %55, %cst_39 {dimension_numbers = #tpu.dot_dimension_numbers<[1], [0], [0], [1], [0, 0, 1, 1], [], []>} : vector<16x128xbf16>, vector<128x128xbf16>, vector<16x128xf32> -> vector<16x128xf32>
    %58 = arith.addf %54, %57 : vector<16x128xf32>
    %59 = vector.broadcast %5 : vector<1x128xf32> to vector<16x128xf32>
    %60 = arith.addf %58, %59 : vector<16x128xf32>
    %cst_40 = arith.constant 0.000000e+00 : f32
    %61 = vector.broadcast %cst_40 : f32 to vector<16x128xf32>
    %62 = arith.cmpf oge, %60, %61 : vector<16x128xf32>
    %cst_41 = arith.constant 0.00999999977 : f32
    %63 = vector.broadcast %cst_41 : f32 to vector<16x128xf32>
    %64 = arith.mulf %63, %60 : vector<16x128xf32>
    %65 = arith.select %62, %60, %64 : vector<16x128xi1>, vector<16x128xf32>
    %66 = vector.broadcast %6 : vector<1x128xf32> to vector<16x128xf32>
    %67 = arith.mulf %65, %66 : vector<16x128xf32>
    %cst_42 = arith.constant dense<0.000000e+00> : vector<16xf32>
    %68 = vector.multi_reduction <add>, %67, %cst_42 [1] : vector<16x128xf32> to vector<16xf32>
    %69 = vector.shape_cast %68 : vector<16xf32> to vector<16x1xf32>
    %70 = vector.broadcast %8 : f32 to vector<16x1xf32>
    %71 = arith.addf %69, %70 : vector<16x1xf32>
    %c0_43 = arith.constant 0 : index
    %c0_44 = arith.constant 0 : index
    %72 = vector.load %arg13[%c0_43, %c0_44] : memref<16x1xf32, #tpu.memory_space<vmem>>, vector<16x1xf32>
    tpu.vector_store %arg13[%c0_43, %c0_44], %71 {strides = array<i32>} : memref<16x1xf32, #tpu.memory_space<vmem>>, vector<16x1xf32>,
    return
  }
  func.func @transform_0(%arg0: i32) -> (i32, i32) {
    %c0_i32 = arith.constant 0 : i32
    %c0_i32_0 = arith.constant 0 : i32
    return %arg0, %c0_i32 : i32, i32
  }
  func.func @transform_1(%arg0: i32) -> (i32, i32) {
    %c0_i32 = arith.constant 0 : i32
    %c0_i32_0 = arith.constant 0 : i32
    return %arg0, %c0_i32 : i32, i32
  }
  func.func @transform_2(%arg0: i32) -> (i32, i32) {
    %c0_i32 = arith.constant 0 : i32
    %c0_i32_0 = arith.constant 0 : i32
    return %arg0, %c0_i32 : i32, i32
  }
  func.func @transform_3(%arg0: i32) -> (i32, i32) {
    %c0_i32 = arith.constant 0 : i32
    %c0_i32_0 = arith.constant 0 : i32
    return %arg0, %c0_i32 : i32, i32
  }
  func.func @transform_4(%arg0: i32) -> (i32, i32) {
    %c0_i32 = arith.constant 0 : i32
    %c0_i32_0 = arith.constant 0 : i32
    %c0_i32_1 = arith.constant 0 : i32
    return %c0_i32, %c0_i32_0 : i32, i32
  }
  func.func @transform_5(%arg0: i32) -> (i32, i32) {
    %c0_i32 = arith.constant 0 : i32
    %c0_i32_0 = arith.constant 0 : i32
    %c0_i32_1 = arith.constant 0 : i32
    return %c0_i32, %c0_i32_0 : i32, i32
  }
  func.func @transform_6(%arg0: i32) -> (i32, i32) {
    %c0_i32 = arith.constant 0 : i32
    %c0_i32_0 = arith.constant 0 : i32
    %c0_i32_1 = arith.constant 0 : i32
    return %c0_i32, %c0_i32_0 : i32, i32
  }
  func.func @transform_7(%arg0: i32) -> (i32, i32) {
    %c0_i32 = arith.constant 0 : i32
    %c0_i32_0 = arith.constant 0 : i32
    %c0_i32_1 = arith.constant 0 : i32
    return %c0_i32, %c0_i32_0 : i32, i32
  }
  func.func @transform_8(%arg0: i32) -> (i32, i32) {
    %c0_i32 = arith.constant 0 : i32
    %c0_i32_0 = arith.constant 0 : i32
    %c0_i32_1 = arith.constant 0 : i32
    return %c0_i32, %c0_i32_0 : i32, i32
  }
  func.func @transform_9(%arg0: i32) -> (i32, i32) {
    %c0_i32 = arith.constant 0 : i32
    %c0_i32_0 = arith.constant 0 : i32
    %c0_i32_1 = arith.constant 0 : i32
    return %c0_i32, %c0_i32_0 : i32, i32
  }
  func.func @transform_10(%arg0: i32) -> (i32, i32) {
    %c0_i32 = arith.constant 0 : i32
    %c0_i32_0 = arith.constant 0 : i32
    %c0_i32_1 = arith.constant 0 : i32
    return %c0_i32, %c0_i32_0 : i32, i32
  }
  func.func @transform_11(%arg0: i32) -> (i32, i32) {
    %c0_i32 = arith.constant 0 : i32
    %c0_i32_0 = arith.constant 0 : i32
    %c0_i32_1 = arith.constant 0 : i32
    return %c0_i32, %c0_i32_0 : i32, i32
  }
  func.func @transform_12(%arg0: i32) -> (i32, i32) {
    %c0_i32 = arith.constant 0 : i32
    %c0_i32_0 = arith.constant 0 : i32
    return %arg0, %c0_i32 : i32, i32
  }
}

</mosaic_0001>

<bundles_post_ra>
// kernel: mixed_model_forward.1
= control target key start
LH: loop header
LB: loop body
LE: loop exit
PB: predicated region body
PF: predicated region fallthrough
CT: control target
= control target key end

     0   :  { %s2702_s0 = inlined_call_operand.vmem [shape: bf16[32,256], index: 0, kind: input, shape index: {}]   ;;  %s2703_s1 = inlined_call_operand.vmem [shape: bf16[32,256], index: 1, kind: input, shape index: {}]   ;;  %s2704_s2 = inlined_call_operand.vmem [shape: bf16[32,256], index: 2, kind: input, shape index: {}]   ;;  %s2705_s3 = inlined_call_operand.vmem [shape: bf16[32,256], index: 3, kind: input, shape index: {}]   ;;  %s2706_s4 = inlined_call_operand.vmem [shape: bf16[256,128], index: 4, kind: input, shape index: {}]   ;;  %s2707_s5 = inlined_call_operand.vmem [shape: bf16[128,128], index: 5, kind: input, shape index: {}]   ;;  %s2708_s6 = inlined_call_operand.hbm [shape: bf16[128,128], index: 6, kind: input, shape index: {}]   ;;  %s2709_s7 = inlined_call_operand.hbm [shape: bf16[256,128], index: 7, kind: input, shape index: {}]   ;;  %s2710_s8 = inlined_call_operand.hbm [shape: bf16[128,128], index: 8, kind: input, shape index: {}]   ;;  %s2711_s9 = inlined_call_operand.hbm [shape: bf16[128,128], index: 9, kind: input, shape index: {}]   ;;  %s2712_s10 = inlined_call_operand.hbm [shape: bf16[128,128], index: 10, kind: input, shape index: {}]   ;;  %s2713_s11 = inlined_call_operand.vmem [shape: f32[8,128], index: 11, kind: input, shape index: {}]   ;;  %s2714_s12 = inlined_call_operand.vmem [shape: f32[32,1], index: 12, kind: output, shape index: {}]  }
   0x1   :  { %2720 = sst [smem:[#allocation13_spill]] %s2713_s11 }
   0x2   :  { %2721 = sst [smem:[#allocation14_spill]] %s2714_s12 }
   0x3   :  { %17 = vsyncpa [#allocation3], 0 }
   0x4   :  { %18 = vsyncpa [#allocation5], 0 }
   0x5   :  { %19 = vsyncpa [#allocation8], 0  ;;  %s2354_s21 = smov 0  }
   0x6 LB: > { %s2715_s22 = sadd.s32 4294967295, %s2278_s21   ;;  %p1682_p0 = scmp.ge.s32.totalorder %s2278_s21, 1  ;;  %s2278_s21 = sphi %s2354_s21, %s25_s21  }
   0x7   : > { %p328_p1 = scmp.lt.s32.totalorder %s2278_s21, 3  ;;  %p2364_p2 = scmp.eq.s32.totalorder %s2715_s22, 0 }
   0x8   : > { %s2280_s25 = smov [#allocation4]   ;;  %s2281_s27 = smov [#allocation7]  }
   0x9   : > { %s2722_s23 = scalar_select %p2364_p2, 1, 0 }
   0xa   : > { %p2368_p3 = pnand %p1682_p0, %p328_p1  ;;  %s359_s26 = sshll.u32 %s2280_s25, 4  ;;  %s2372_s26 = int_to_ptr.vmem [resolvable:$true] %s359_s26 }
   0xb   : > { %s385_s28 = sshll.u32 %s2281_s27, 4  ;;  %s2282_s30 = smov [#allocation2]   ;;  %s2376_s28 = int_to_ptr.vmem [resolvable:$true] %s385_s28 }
   0xc   : > { %s2723_s24 = scalar_select %p2368_p3, 1, 0 }
   0xd   : > { %p2005_p4 = pneg %p2368_p3  ;;  %s346_s13 = sshll.u32 %s2282_s30, 4  ;;  %s2384_s13 = int_to_ptr.vmem [resolvable:$true] %s346_s13 }
   0xe   : > { %s2283_s14 = smov [#allocation6]   ;;  %s2120_s18 = scalar_lea.hbm %s2709_s7, 2048 }
   0xf   : > { %p2380_p5 = pnand %p2364_p2, %p2005_p4  ;;  %s2386_s15 = sshll.u32 %s2283_s14, 4  ;;  %s373_s15 = int_to_ptr.vmem [resolvable:$true] %s2386_s15 }
  0x10   : > { %p2121_p6 = scmp.ne.s32.totalorder %s2709_s7, %s2120_s18  ;;  %p2127_p10 = scmp.lt.u32.totalorder %s2120_s18, %s2709_s7 }
  0x11   : > { %p2396_p7 = pneg %p2380_p5 }
  0x13   : > { %p2123_p8 = pnand %p2396_p7, %p2121_p6 }
  0x15   : > { %p2124_p9 = pneg %p2123_p8 }
  0x17   : > { %p2129_p11 = pnand %p2127_p10, %p2124_p9 }
  0x19   : > { %2132 = shalt.err (!%p2129_p11)
}
  0x1a   : > { %s2133_s14 = scalar_lea.vmem %s2372_s26, 2048  ;;  %p2141_p1 = scmp.lt.s32.totalorder %s2372_s26, %s2372_s26 }
  0x1b   : > { %p2134_p12 = scmp.ne.s32.totalorder %s2372_s26, %s2133_s14  ;;  %p2142_p4 = scmp.lt.s32.totalorder %s2133_s14, %s2133_s14 }
  0x1d   : > { %p2136_p13 = pnand %p2134_p12, %p2396_p7  ;;  %p2143_p6 = por %p2142_p4, %p2141_p1 }
  0x1f   : > { %p2137_p0 = pneg %p2136_p13 }
  0x21   : > { %p2144_p8 = pnand %p2143_p6, %p2137_p0 }
  0x23   : > { %2147 = shalt.err (!%p2144_p8)
}
  0x24   : > { %s2284_s16 = smov 64   ;;  %s2285_s17 = smov 4  }
  0x25   : > { %2011 = dma.hbm_to_vmem [thread:$0]  (!%p2380_p5), %s2709_s7, 2048, %s2372_s26, [#allocation5], %s2284_s16, %s2284_s16, %s2285_s17  }
  0x26   : > { %s2148_s30 = scalar_lea.hbm %s2711_s9, 1024 }
  0x27   : > { %p2149_p9 = scmp.ne.s32.totalorder %s2711_s9, %s2148_s30  ;;  %p2155_p12 = scmp.lt.u32.totalorder %s2148_s30, %s2711_s9 }
  0x29   : > { %p2151_p10 = pnand %p2149_p9, %p2396_p7 }
  0x2b   : > { %p2152_p11 = pneg %p2151_p10 }
  0x2d   : > { %p2157_p13 = pnand %p2155_p12, %p2152_p11 }
  0x2f   : > { %2160 = shalt.err (!%p2157_p13)
}
  0x30   : > { %s2161_s26 = scalar_lea.vmem %s2376_s28, 1024  ;;  %p2169_p6 = scmp.lt.s32.totalorder %s2376_s28, %s2376_s28 }
  0x31   : > { %p2162_p0 = scmp.ne.s32.totalorder %s2376_s28, %s2161_s26  ;;  %p2170_p8 = scmp.lt.s32.totalorder %s2161_s26, %s2161_s26 }
  0x33   : > { %p2164_p1 = pnand %p2162_p0, %p2396_p7  ;;  %p2171_p9 = por %p2170_p8, %p2169_p6 }
  0x35   : > { %p2165_p4 = pneg %p2164_p1 }
  0x37   : > { %p2172_p10 = pnand %p2171_p9, %p2165_p4 }
  0x39   : > { %2175 = shalt.err (!%p2172_p10)
}
  0x3a   : > { %2017 = dma.hbm_to_vmem [thread:$0]  (!%p2380_p5), %s2711_s9, 1024, %s2376_s28, [#allocation8], %s2284_s16, %s2284_s16, %s2285_s17  }
  0x3b   : > { %s2176_s19 = scalar_lea.hbm %s2708_s6, 1024 }
  0x3c   : > { %p2177_p11 = scmp.ne.s32.totalorder %s2708_s6, %s2176_s19  ;;  %p2183_p0 = scmp.lt.u32.totalorder %s2176_s19, %s2708_s6 }
  0x3e   : > { %p2179_p12 = pnand %p2177_p11, %p2396_p7 }
  0x40   : > { %p2180_p13 = pneg %p2179_p12 }
  0x42   : > { %p2185_p1 = pnand %p2183_p0, %p2180_p13 }
  0x44   : > { %2188 = shalt.err (!%p2185_p1)
}
  0x45   : > { %s2189_s28 = scalar_lea.vmem %s2384_s13, 1024  ;;  %p2197_p9 = scmp.lt.s32.totalorder %s2384_s13, %s2384_s13 }
  0x46   : > { %p2190_p4 = scmp.ne.s32.totalorder %s2384_s13, %s2189_s28  ;;  %p2198_p10 = scmp.lt.s32.totalorder %s2189_s28, %s2189_s28 }
  0x48   : > { %p2192_p6 = pnand %p2190_p4, %p2396_p7  ;;  %p2199_p11 = por %p2198_p10, %p2197_p9 }
  0x4a   : > { %p2193_p8 = pneg %p2192_p6 }
  0x4c   : > { %p2200_p12 = pnand %p2199_p11, %p2193_p8 }
  0x4e   : > { %2203 = shalt.err (!%p2200_p12)
}
  0x4f   : > { %2008 = dma.hbm_to_vmem [thread:$0]  (!%p2380_p5), %s2708_s6, 1024, %s2384_s13, [#allocation3], %s2284_s16, %s2284_s16, %s2285_s17  }
  0x50   : > { %s2204_s18 = scalar_lea.hbm %s2710_s8, 1024 }
  0x51   : > { %p2205_p13 = scmp.ne.s32.totalorder %s2710_s8, %s2204_s18  ;;  %p2211_p4 = scmp.lt.u32.totalorder %s2204_s18, %s2710_s8 }
  0x53   : > { %p2207_p0 = pnand %p2205_p13, %p2396_p7 }
  0x55   : > { %p2208_p1 = pneg %p2207_p0 }
  0x57   : > { %p2213_p6 = pnand %p2211_p4, %p2208_p1 }
  0x59   : > { %2216 = shalt.err (!%p2213_p6)
}
  0x5a   : > { %s2217_s14 = scalar_lea.vmem %s373_s15, 1024  ;;  %p2225_p11 = scmp.lt.s32.totalorder %s373_s15, %s373_s15 }
  0x5b   : > { %p2218_p8 = scmp.ne.s32.totalorder %s373_s15, %s2217_s14  ;;  %p2226_p12 = scmp.lt.s32.totalorder %s2217_s14, %s2217_s14 }
  0x5d   : > { %p2220_p9 = pnand %p2218_p8, %p2396_p7  ;;  %p2227_p2 = por %p2226_p12, %p2225_p11 }
  0x5f   : > { %p2221_p10 = pneg %p2220_p9 }
  0x61   : > { %p2228_p3 = pnand %p2227_p2, %p2221_p10 }
  0x63   : > { %2231 = shalt.err (!%p2228_p3)
}
  0x64   : > { %2014 = dma.hbm_to_vmem [thread:$0]  (!%p2380_p5), %s2710_s8, 1024, %s373_s15, [#allocation5], %s2284_s16, %s2284_s16, %s2285_s17  }
  0x65   : > { %s2286_s26 = smov [#allocation9]   ;;  %s2232_s18 = scalar_lea.hbm %s2712_s10, 1024 }
  0x66   : > { %s398_s11 = sshll.u32 %s2286_s26, 4  ;;  %p2233_p2 = scmp.ne.s32.totalorder %s2712_s10, %s2232_s18  ;;  %s399_s11 = int_to_ptr.vmem [resolvable:$true] %s398_s11 }
  0x67   : > { %p2239_p0 = scmp.lt.u32.totalorder %s2232_s18, %s2712_s10 }
  0x68   : > { %p2235_p3 = pnand %p2233_p2, %p2396_p7 }
  0x6a   : > { %p2236_p13 = pneg %p2235_p3 }
  0x6c   : > { %p2241_p1 = pnand %p2239_p0, %p2236_p13 }
  0x6e   : > { %2244 = shalt.err (!%p2241_p1)
}
  0x6f   : > { %s2245_s15 = scalar_lea.vmem %s399_s11, 1024  ;;  %p2253_p9 = scmp.lt.s32.totalorder %s399_s11, %s399_s11 }
  0x70   : > { %p2246_p4 = scmp.ne.s32.totalorder %s399_s11, %s2245_s15  ;;  %p2254_p10 = scmp.lt.s32.totalorder %s2245_s15, %s2245_s15 }
  0x72   : > { %p2248_p6 = pnand %p2246_p4, %p2396_p7  ;;  %p2255_p11 = por %p2254_p10, %p2253_p9 }
  0x74   : > { %p2249_p8 = pneg %p2248_p6 }
  0x76   : > { %p2256_p12 = pnand %p2255_p11, %p2249_p8 }
  0x78   : > { %2259 = shalt.err (!%p2256_p12)
}
  0x79   : > { %2020 = dma.hbm_to_vmem [thread:$0]  (!%p2380_p5), %s2712_s10, 1024, %s399_s11, [#allocation8], %s2284_s16, %s2284_s16, %s2285_s17  }
  0x7a   : > { %p2726_p2 = scmp.ne.s32.totalorder %s2723_s24, 0 }
  0x7b   : > { %p2727_p7 = scmp.ne.s32.totalorder (!%p2726_p2), %s2722_s23, 0 }
  0x7c   : > { %457 = sbr.rel (%p2726_p2) target bundleno = 1237 (0x4d5), region = 68 }
  0x83   : > { %2265 = dma.done.wait (%p2727_p7), [#allocation3], 1024  }
  0x84   : > { %2267 = vsyncadd (%p2727_p7), [#allocation3], 4294966272 }
  0x85   : > { %2269 = dma.done.wait (%p2727_p7), [#allocation5], 3072  }
  0x86   : > { %2271 = vsyncadd (%p2727_p7), [#allocation5], 4294964224 }
  0x87   : > { %2273 = dma.done.wait (%p2727_p7), [#allocation8], 2048  }
  0x88   : > { %2275 = vsyncadd (%p2727_p7), [#allocation8], 4294965248  ;;  %v2287_v0 = vmov 0.0   ;;  %s2728_s24 = sadd.s32 4294967295, %s2278_s21   ;;  %v2048_v1 = vld [vmem:[%s2706_s4 + $0x40] sm:$0xff]   ;;  %v2050_v3 = vld [vmem:[%s2706_s4 + $0x48] sm:$0xff]  }
  0x89   : > { %1883 = vmatprep.subr.bf16.mxu1 %v2287_v0  ;;  %s1695_s29 = sshll.u32 %s2728_s24, 1  ;;  %v2049_v2 = vld [vmem:[%s2706_s4] sm:$0xff]   ;;  %1794 = vmatprep.subr.bf16.mxu0 %v2048_v1  ;;  %v2051_v4 = vld [vmem:[%s2706_s4 + $0x8] sm:$0xff]   ;;  %v2052_v5 = vld [vmem:[%s2706_s4 + $0x50] sm:$0xff]   ;;  %vm2288_vm0 = vmmov 0   ;;  %s2729_s22 = sld [smem:[#allocation13_spill]] }
  0x8a   : > { %p535_p5 = scmp.lt.s32.totalorder %s1695_s29, 3  ;;  %1795 = vmatpush3.bf16.msra.mxu0 %v2049_v2  ;;  %v2053_v6 = vld [vmem:[%s2706_s4 + $0x10] sm:$0xff]   ;;  %v2054_v7 = vld [vmem:[%s2706_s4 + $0x58] sm:$0xff]   ;;  %v2056_v9 = vld [vmem:[%s2706_s4 + $0x60] sm:$0xff]   ;;  %1899 = vmatprep.mubr.msk.bf16.mxu1 %vm2288_vm0, %v2287_v0  ;;  %s2730_s18 = sld [smem:[#allocation14_spill]]  ;;  %vm1535_vm3 = vcmask 7168  }
  0x8b   : > { %1796 = vmatprep.subr.bf16.mxu0 %v2050_v3  ;;  %v2055_v8 = vld [vmem:[%s2706_s4 + $0x18] sm:$0xff]   ;;  %v2057_v10 = vld [vmem:[%s2706_s4 + $0x20] sm:$0xff]   ;;  %v2058_v11 = vld [vmem:[%s2706_s4 + $0x68] sm:$0xff]  }
  0x8c   : > { %s2732_s29 = smov (!%p535_p5, %s1695_s29), 3  ;;  %v2064_v20 = vld [vmem:[%s2707_s5] sm:$0xff]   ;;  %v2059_v21 = vld [vmem:[%s2706_s4 + $0x28] sm:$0xff]   ;;  %v2060_v22 = vld [vmem:[%s2706_s4 + $0x70] sm:$0xff]  }
  0x8d   : > { %s2553_s15 = sshll.u32 %s2732_s29, 3  ;;  %v2061_v25 = vld [vmem:[%s2706_s4 + $0x30] sm:$0xff]   ;;  %1884 = vmatpush3.bf16.msra.mxu1 %v2064_v20  ;;  %v2065_v27 = vld [vmem:[%s2707_s5 + $0x8] sm:$0xff]   ;;  %v2062_v28 = vld [vmem:[%s2706_s4 + $0x78] sm:$0xff]  }
  0x8e   : > { %1797 = vmatpush3.bf16.msra.mxu0 %v2051_v4  ;;  %s539_s28 = scalar_lea.vmem %s2702_s0, %s2553_s15  ;;  %s546_s29 = scalar_lea.vmem %s2703_s1, %s2553_s15  ;;  %1885 = vmatprep.subr.bf16.mxu1 %v2287_v0  ;;  %v2066_v33 = vld [vmem:[%s2707_s5 + $0x10] sm:$0xff]   ;;  %v2063_v34 = vld [vmem:[%s2706_s4 + $0x38] sm:$0xff]   ;;  %v2068_v39 = vld [vmem:[%s2707_s5 + $0x20] sm:$0xff]  }
  0x8f   : > { %1798 = vmatprep.subr.bf16.mxu0 %v2052_v5  ;;  %v578_v12 = vld [vmem:[%s546_s29] sm:$0xff]  ;;  %v579_v13 = vld [vmem:[%s546_s29 + $0x8] sm:$0xff]  ;;  %v2067_v37 = vld [vmem:[%s2707_s5 + $0x18] sm:$0xff]   ;;  %s553_s29 = scalar_lea.vmem %s2704_s2, %s2553_s15 }
  0x90   : > { %v584_v14 = vld [vmem:[%s539_s28] sm:$0xff]  ;;  %v581_v15 = vunpack.c.h.bf16 %v578_v12  ;;  %v583_v16 = vunpack.c.h.bf16 %v579_v13  ;;  %v585_v17 = vld [vmem:[%s539_s28 + $0x8] sm:$0xff]  ;;  %v580_v26 = vunpack.c.l.bf16 %v578_v12  ;;  %v582_v29 = vunpack.c.l.bf16 %v579_v13  ;;  %v2070_v41 = vld [vmem:[%s2707_s5 + $0x30] sm:$0xff]   ;;  %s560_s28 = scalar_lea.vmem %s2705_s3, %s2553_s15  ;;  %s566_s19 = scalar_lea.vmem %s2730_s18, %s2553_s15 }
  0x91   : > { %v587_v18 = vunpack.c.h.bf16 %v584_v14  ;;  %v589_v19 = vunpack.c.h.bf16 %v585_v17  ;;  %v586_v30 = vunpack.c.l.bf16 %v584_v14  ;;  %v588_v31 = vunpack.c.l.bf16 %v585_v17  ;;  %1886 = vmatpush3.bf16.msra.mxu1 %v2065_v27  ;;  %v2069_v40 = vld [vmem:[%s2707_s5 + $0x28] sm:$0xff]   ;;  %v2071_v42 = vld [vmem:[%s2707_s5 + $0x38] sm:$0xff]   ;;  %v2072_v43 = vld [vmem:[#allocation4 + $0x40] sm:$0xff]  }
  0x92   : > { %1799 = vmatpush3.bf16.msra.mxu0 %v2053_v6  ;;  %1887 = vmatprep.subr.bf16.mxu1 %v2287_v0  ;;  %v2088_v44 = vld [vmem:[#allocation2] sm:$0xff]   ;;  %v2089_v45 = vld [vmem:[#allocation2 + $0x8] sm:$0xff]   ;;  %v2090_v46 = vld [vmem:[#allocation2 + $0x10] sm:$0xff]  }
  0x93   : > { %1800 = vmatprep.subr.bf16.mxu0 %v2054_v7  ;;  %v591_v23 = vsub.f32 %v581_v15, %v587_v18  ;;  %v593_v24 = vsub.f32 %v583_v16, %v589_v19  ;;  %v590_v35 = vsub.f32 %v580_v26, %v586_v30  ;;  %v592_v36 = vsub.f32 %v582_v29, %v588_v31  ;;  %v2091_v47 = vld [vmem:[#allocation2 + $0x18] sm:$0xff]   ;;  %v2092_v48 = vld [vmem:[#allocation2 + $0x20] sm:$0xff]   ;;  %v2093_v49 = vld [vmem:[#allocation2 + $0x28] sm:$0xff]  }
  0x94   : > { %v993_v50 = vld [vmem:[%s560_s28] sm:$0xff]  ;;  %v994_v51 = vld [vmem:[%s560_s28 + $0x8] sm:$0xff]  ;;  %v2076_v13 = vld [vmem:[#allocation4 + $0x50] sm:$0xff]  }
  0x95   : > { %v627_v32 = vpack.c.bf16 %v593_v24, %v591_v23  ;;  %1888 = vmatpush3.bf16.msra.mxu1 %v2066_v33  ;;  %v626_v38 = vpack.c.bf16 %v592_v36, %v590_v35  ;;  %v999_v52 = vld [vmem:[%s553_s29] sm:$0xff]  ;;  %v1000_v53 = vld [vmem:[%s553_s29 + $0x8] sm:$0xff]  ;;  %v996_v57 = vunpack.c.h.bf16 %v993_v50  ;;  %v998_v58 = vunpack.c.h.bf16 %v994_v51  ;;  %v2077_v14 = vld [vmem:[#allocation4 + $0x10] sm:$0xff]  }
  0x96   : > { %1801 = vmatpush3.bf16.msra.mxu0 %v2055_v8  ;;  %1889 = vmatprep.subr.bf16.mxu1 %v2287_v0  ;;  %v1709_v55 = vld [vmem:[%s2729_s22] ss:$0 sm:$0xff]  ;;  %v1002_v59 = vunpack.c.h.bf16 %v999_v52  ;;  %v1004_v60 = vunpack.c.h.bf16 %v1000_v53  ;;  %v2075_v12 = vld [vmem:[#allocation4 + $0x8] sm:$0xff]   ;;  %v2078_v15 = vld [vmem:[#allocation4 + $0x58] sm:$0xff]   ;;  %v997_v23 = vunpack.c.l.bf16 %v994_v51  ;;  %v1001_v24 = vunpack.c.l.bf16 %v999_v52 }
  0x97   : > { %1802 = vmatprep.subr.bf16.mxu0 %v2056_v9  ;;  %760 = vmatprep.mubr.bf16.mxu0 %v627_v32  ;;  %v2073_v8 = vld [vmem:[#allocation4] sm:$0xff]   ;;  %v2079_v16 = vld [vmem:[#allocation4 + $0x18] sm:$0xff]   ;;  %v2082_v19 = vld [vmem:[#allocation4 + $0x68] sm:$0xff]  }
  0x98   : > { %v1006_v3 = vsub.f32 %v996_v57, %v1002_v59  ;;  %v1008_v4 = vsub.f32 %v998_v58, %v1004_v60  ;;  %v2080_v17 = vld [vmem:[#allocation4 + $0x60] sm:$0xff]   ;;  %v2083_v20 = vld [vmem:[#allocation4 + $0x28] sm:$0xff]   ;;  %v2085_v26 = vld [vmem:[#allocation4 + $0x30] sm:$0xff]  }
  0x99   : > { %1890 = vmatpush3.bf16.msra.mxu1 %v2067_v37  ;;  %v2081_v18 = vld [vmem:[#allocation4 + $0x20] sm:$0xff]   ;;  %v2086_v27 = vld [vmem:[#allocation4 + $0x78] sm:$0xff]   ;;  %v2094_v32 = vld [vmem:[#allocation2 + $0x30] sm:$0xff]  }
  0x9a   : > { %1803 = vmatpush3.bf16.msra.mxu0 %v2057_v10  ;;  %1891 = vmatprep.subr.bf16.mxu1 %v2287_v0  ;;  %v1042_v9 = vpack.c.bf16 %v1008_v4, %v1006_v3  ;;  %v2087_v30 = vld [vmem:[#allocation4 + $0x38] sm:$0xff]   ;;  %v1744_v52 = vld [vmem:[%s2729_s22 + $0x3] ss:$0 sm:$0xff]  ;;  %v2106_v3 = vld [vmem:[#allocation7 + $0x10] sm:$0xff]  }
  0x9b   : > { %1804 = vmatprep.subr.bf16.mxu0 %v2058_v11  ;;  %v2074_v11 = vld [vmem:[#allocation4 + $0x48] sm:$0xff]   ;;  %v2095_v33 = vld [vmem:[#allocation2 + $0x38] sm:$0xff]  }
  0x9c   : > { %v2107_v4 = vld [vmem:[#allocation7 + $0x18] sm:$0xff]  }
  0x9d   : > { %1892 = vmatpush3.bf16.msra.mxu1 %v2068_v39 }
  0x9e   : > { %1805 = vmatpush3.bf16.msra.mxu0 %v2059_v21  ;;  %1893 = vmatprep.subr.bf16.mxu1 %v2287_v0  ;;  %v2084_v21 = vld [vmem:[#allocation4 + $0x70] sm:$0xff]  }
  0x9f   : > { %1806 = vmatprep.subr.bf16.mxu0 %v2060_v22  ;;  %v995_v22 = vunpack.c.l.bf16 %v993_v50  ;;  %v2102_v50 = vld [vmem:[#allocation6 + $0x30] sm:$0xff]  }
  0xa1   : > { %1894 = vmatpush3.bf16.msra.mxu1 %v2069_v40 }
  0xa2   : > { %1807 = vmatpush3.bf16.msra.mxu0 %v2061_v25  ;;  %1895 = vmatprep.subr.bf16.mxu1 %v2287_v0  ;;  %v1003_v25 = vunpack.c.l.bf16 %v1000_v53 }
  0xa3   : > { %1808 = vmatprep.subr.bf16.mxu0 %v2062_v28  ;;  %v1005_v28 = vsub.f32 %v995_v22, %v1001_v24 }
  0xa4   : > { %v1007_v29 = vsub.f32 %v997_v23, %v1003_v25  ;;  %v1761_v25 = vld [vmem:[%s2729_s22 + $0x4] ss:$0 sm:$0xff] }
  0xa5   : > { %1896 = vmatpush3.bf16.msra.mxu1 %v2070_v41 }
  0xa6   : > { %1809 = vmatpush3.bf16.msra.mxu0 %v2063_v34  ;;  %1897 = vmatprep.subr.bf16.mxu1 %v2287_v0  ;;  %v1041_v31 = vpack.c.bf16 %v1007_v29, %v1005_v28  ;;  %v1726_v34 = vld [vmem:[%s2729_s22 + $0x1] ss:$0 sm:$0xff] }
  0xa7   : > { %1903 = vmatprep.subr.bf16.mxu0 %v2287_v0 }
  0xa9   : > { %761 = vmatmul.mubr.bf16.vlgmr.msra.gmra.mrb[0].mxu0 %v626_v38  ;;  %1898 = vmatpush3.bf16.msra.mxu1 %v2071_v42 }
  0xaa   : > { %1919 = vmatprep.mubr.msk.bf16.mxu0 %vm2288_vm0, %v2287_v0  ;;  %1834 = vmatprep.subr.bf16.mxu1 %v2072_v43  ;;  %v2096_v43 = vld [vmem:[#allocation6] sm:$0xff]  }
  0xab   : > { %1904 = vmatpush3.bf16.msra.mxu0 %v2088_v44 }
  0xac   : > { %1905 = vmatprep.subr.bf16.mxu0 %v2287_v0 }
  0xaf   : > { %1906 = vmatpush3.bf16.msra.mxu0 %v2089_v45  ;;  %v2097_v45 = vld [vmem:[#allocation6 + $0x8] sm:$0xff]  }
  0xb0   : > { %1907 = vmatprep.subr.bf16.mxu0 %v2287_v0 }
  0xb3   : > { %1908 = vmatpush3.bf16.msra.mxu0 %v2090_v46  ;;  %v2098_v46 = vld [vmem:[#allocation6 + $0x10] sm:$0xff]  }
  0xb4   : > { %1909 = vmatprep.subr.bf16.mxu0 %v2287_v0 }
  0xb7   : > { %1910 = vmatpush3.bf16.msra.mxu0 %v2091_v47  ;;  %v2099_v47 = vld [vmem:[#allocation6 + $0x18] sm:$0xff]  }
  0xb8   : > { %1911 = vmatprep.subr.bf16.mxu0 %v2287_v0 }
  0xbb   : > { %1912 = vmatpush3.bf16.msra.mxu0 %v2092_v48  ;;  %v2100_v48 = vld [vmem:[#allocation6 + $0x20] sm:$0xff]  }
  0xbc   : > { %1913 = vmatprep.subr.bf16.mxu0 %v2287_v0 }
  0xbf   : > { %1914 = vmatpush3.bf16.msra.mxu0 %v2093_v49  ;;  %v2101_v49 = vld [vmem:[#allocation6 + $0x28] sm:$0xff]  }
  0xc0   : > { %1915 = vmatprep.subr.bf16.mxu0 %v2287_v0 }
  0xc3   : > { %1916 = vmatpush3.bf16.msra.mxu0 %v2094_v32 }
  0xc4   : > { %1917 = vmatprep.subr.bf16.mxu0 %v2287_v0 }
  0xc7   : > { %1918 = vmatpush3.bf16.msra.mxu0 %v2095_v33 }
  0xc8   : > { %1923 = vmatprep.subr.bf16.mxu0 %v2287_v0 }
 0x17c   : > { %v1810_v54 = vpop.f32.mrb[0].mxu0 }
 0x17d   : > { %v1811_v56 = vpop.f32.mrb[1].mxu0 }
 0x17e   : > { %v1812_v61 = vadd.f32 %v1811_v56, %v1810_v54  ;;  %v1813_v62 = vpop.f32.mrb[2].mxu0  ;;  %v2103_v56 = vld [vmem:[#allocation6 + $0x38] sm:$0xff]  }
 0x17f   : > { %v1814_v63 = vpop.f32.mrb[3].mxu0 }
 0x180   : > { %v763_v1 = vadd.f32 %v1812_v61, %v1709_v55  ;;  %v1815_v2 = vadd.f32 %v1814_v63, %v1813_v62  ;;  %v2104_v63 = vld [vmem:[#allocation7] sm:$0xff]  }
 0x182   : > { %v766_v5 = vadd.f32 %v1815_v2, %v1709_v55  ;;  %v769_v6 = vmax.f32 %v763_v1, 0.0  ;;  %v2105_v2 = vld [vmem:[#allocation7 + $0x8] sm:$0xff]  }
 0x184   : > { %v770_v7 = vmax.f32 %v766_v5, 0.0  ;;  %v2108_v5 = vld [vmem:[#allocation7 + $0x20] sm:$0xff]  }
 0x186   : > { %v787_v10 = vpack.c.bf16 %v770_v7, %v769_v6  ;;  %v2109_v6 = vld [vmem:[#allocation7 + $0x28] sm:$0xff]   ;;  %v2110_v7 = vld [vmem:[#allocation7 + $0x30] sm:$0xff]  }
 0x188   : > { %1900 = vmatmul.mubr.bf16.vlgmr.msra.gmra.mrb[0].mxu1 %v787_v10  ;;  %v2113_v10 = vld [vmem:[#allocation9 + $0x8] sm:$0xff]  }
 0x189   : > { %1835 = vmatpush3.bf16.msra.mxu1 %v2073_v8  ;;  %1175 = vmatprep.mubr.bf16.mxu1 %v1042_v9  ;;  %v2111_v8 = vld [vmem:[#allocation7 + $0x38] sm:$0xff]   ;;  %v2112_v9 = vld [vmem:[#allocation9] sm:$0xff]  }
 0x18a   : > { %1836 = vmatprep.subr.bf16.mxu1 %v2074_v11  ;;  %v2114_v11 = vld [vmem:[#allocation9 + $0x10] sm:$0xff]  }
 0x18d   : > { %1837 = vmatpush3.bf16.msra.mxu1 %v2075_v12  ;;  %v2115_v12 = vld [vmem:[#allocation9 + $0x18] sm:$0xff]  }
 0x18e   : > { %1838 = vmatprep.subr.bf16.mxu1 %v2076_v13  ;;  %v2116_v13 = vld [vmem:[#allocation9 + $0x20] sm:$0xff]  }
 0x191   : > { %1839 = vmatpush3.bf16.msra.mxu1 %v2077_v14  ;;  %v2117_v14 = vld [vmem:[#allocation9 + $0x28] sm:$0xff]  }
 0x192   : > { %1840 = vmatprep.subr.bf16.mxu1 %v2078_v15  ;;  %v2118_v15 = vld [vmem:[#allocation9 + $0x30] sm:$0xff]  }
 0x195   : > { %1841 = vmatpush3.bf16.msra.mxu1 %v2079_v16  ;;  %v2119_v16 = vld [vmem:[#allocation9 + $0x38] sm:$0xff]  }
 0x196   : > { %1842 = vmatprep.subr.bf16.mxu1 %v2080_v17  ;;  %v1735_v17 = vld [vmem:[%s2729_s22 + $0x2] ss:$0 sm:$0xff] }
 0x199   : > { %1843 = vmatpush3.bf16.msra.mxu1 %v2081_v18 }
 0x19a   : > { %1844 = vmatprep.subr.bf16.mxu1 %v2082_v19 }
 0x19d   : > { %1845 = vmatpush3.bf16.msra.mxu1 %v2083_v20 }
 0x19e   : > { %1846 = vmatprep.subr.bf16.mxu1 %v2084_v21 }
 0x1a1   : > { %1847 = vmatpush3.bf16.msra.mxu1 %v2085_v26 }
 0x1a2   : > { %1848 = vmatprep.subr.bf16.mxu1 %v2086_v27 }
 0x1a5   : > { %1849 = vmatpush3.bf16.msra.mxu1 %v2087_v30 }
 0x1a6   : > { %1943 = vmatprep.subr.bf16.mxu1 %v2287_v0 }
 0x1a8   : > { %1176 = vmatmul.mubr.bf16.vlgmr.msra.gmra.mrb[4].mxu1 %v1041_v31 }
 0x1a9   : > { %1959 = vmatprep.mubr.msk.bf16.mxu1 %vm2288_vm0, %v2287_v0  ;;  %1944 = vmatpush3.bf16.msra.mxu1 %v2112_v9 }
 0x1aa   : > { %1945 = vmatprep.subr.bf16.mxu1 %v2287_v0 }
 0x1ad   : > { %1946 = vmatpush3.bf16.msra.mxu1 %v2113_v10 }
 0x1ae   : > { %1947 = vmatprep.subr.bf16.mxu1 %v2287_v0 }
 0x1b1   : > { %1948 = vmatpush3.bf16.msra.mxu1 %v2114_v11 }
 0x1b2   : > { %1949 = vmatprep.subr.bf16.mxu1 %v2287_v0 }
 0x1b5   : > { %1950 = vmatpush3.bf16.msra.mxu1 %v2115_v12 }
 0x1b6   : > { %1951 = vmatprep.subr.bf16.mxu1 %v2287_v0 }
 0x1b9   : > { %1952 = vmatpush3.bf16.msra.mxu1 %v2116_v13 }
 0x1ba   : > { %1953 = vmatprep.subr.bf16.mxu1 %v2287_v0 }
 0x1bd   : > { %1954 = vmatpush3.bf16.msra.mxu1 %v2117_v14 }
 0x1be   : > { %1955 = vmatprep.subr.bf16.mxu1 %v2287_v0 }
 0x1c1   : > { %1956 = vmatpush3.bf16.msra.mxu1 %v2118_v15 }
 0x1c2   : > { %1957 = vmatprep.subr.bf16.mxu1 %v2287_v0 }
 0x1c5   : > { %1958 = vmatpush3.bf16.msra.mxu1 %v2119_v16 }
 0x25b   : > { %v874_v35 = vpop.f32.mrb[0].mxu1 }
 0x25c   : > { %v875_v36 = vadd.f32 %v1726_v34, %v874_v35  ;;  %v1901_v37 = vpop.f32.mrb[1].mxu1 }
 0x25d   : > { %v877_v38 = vpop.f32.mrb[2].mxu1 }
 0x25e   : > { %v878_v39 = vadd.f32 %v1726_v34, %v877_v38  ;;  %v1902_v40 = vpop.f32.mrb[3].mxu1  ;;  %v881_v41 = vmax.f32 %v875_v36, 0.0  ;;  %v576_v34 = vld [vmem:[%s2729_s22 + $0x7] sm:$0x1] }
 0x25f   : > { %1983 = vpush %v576_v34 }
 0x260   : > { %v882_v42 = vmax.f32 %v878_v39, 0.0  ;;  %v1786_v39 = vld [vmem:[%s2729_s22 + $0x5] ss:$0 sm:$0xff] }
 0x262   : > { %v899_v44 = vpack.c.bf16 %v882_v42, %v881_v41 }
 0x264   : > { %1920 = vmatmul.mubr.bf16.vlgmr.msra.gmra.mrb[4].mxu0 %v899_v44 }
 0x265   : > { %1924 = vmatpush3.bf16.msra.mxu0 %v2096_v43  ;;  %1939 = vmatprep.mubr.msk.bf16.mxu0 %vm2288_vm0, %v2287_v0 }
 0x266   : > { %1925 = vmatprep.subr.bf16.mxu0 %v2287_v0 }
 0x269   : > { %1926 = vmatpush3.bf16.msra.mxu0 %v2097_v45 }
 0x26a   : > { %1927 = vmatprep.subr.bf16.mxu0 %v2287_v0 }
 0x26d   : > { %1928 = vmatpush3.bf16.msra.mxu0 %v2098_v46 }
 0x26e   : > { %1929 = vmatprep.subr.bf16.mxu0 %v2287_v0 }
 0x271   : > { %1930 = vmatpush3.bf16.msra.mxu0 %v2099_v47 }
 0x272   : > { %1931 = vmatprep.subr.bf16.mxu0 %v2287_v0 }
 0x275   : > { %1932 = vmatpush3.bf16.msra.mxu0 %v2100_v48  ;;  %v1787_v48 = vld [vmem:[%s2729_s22 + $0x6] ss:$0 sm:$0xff] }
 0x276   : > { %1933 = vmatprep.subr.bf16.mxu0 %v2287_v0 }
 0x279   : > { %1934 = vmatpush3.bf16.msra.mxu0 %v2101_v49 }
 0x27a   : > { %1935 = vmatprep.subr.bf16.mxu0 %v2287_v0 }
 0x27b   : > { %v1850_v51 = vpop.f32.mrb[4].mxu1 }
 0x27c   : > { %v1851_v53 = vpop.f32.mrb[5].mxu1 }
 0x27d   : > { %v1852_v54 = vadd.f32 %v1851_v53, %v1850_v51  ;;  %v1853_v55 = vpop.f32.mrb[6].mxu1  ;;  %1936 = vmatpush3.bf16.msra.mxu0 %v2102_v50 }
 0x27e   : > { %v1854_v57 = vpop.f32.mrb[7].mxu1  ;;  %1937 = vmatprep.subr.bf16.mxu0 %v2287_v0 }
 0x27f   : > { %v1178_v58 = vadd.f32 %v1852_v54, %v1744_v52  ;;  %v1855_v59 = vadd.f32 %v1854_v57, %v1853_v55 }
 0x281   : > { %v1181_v60 = vadd.f32 %v1855_v59, %v1744_v52  ;;  %1938 = vmatpush3.bf16.msra.mxu0 %v2103_v56  ;;  %v1184_v61 = vmax.f32 %v1178_v58, 0.0 }
 0x282   : > { %1963 = vmatprep.subr.bf16.mxu0 %v2287_v0 }
 0x283   : > { %v1185_v62 = vmax.f32 %v1181_v60, 0.0 }
 0x285   : > { %v1202_v1 = vpack.c.bf16 %v1185_v62, %v1184_v61 }
 0x287   : > { %1940 = vmatmul.mubr.bf16.vlgmr.msra.gmra.mrb[8].mxu0 %v1202_v1 }
 0x288   : > { %1964 = vmatpush3.bf16.msra.mxu0 %v2104_v63  ;;  %1979 = vmatprep.mubr.msk.bf16.mxu0 %vm2288_vm0, %v2287_v0 }
 0x289   : > { %1965 = vmatprep.subr.bf16.mxu0 %v2287_v0 }
 0x28c   : > { %1966 = vmatpush3.bf16.msra.mxu0 %v2105_v2 }
 0x28d   : > { %1967 = vmatprep.subr.bf16.mxu0 %v2287_v0 }
 0x290   : > { %1968 = vmatpush3.bf16.msra.mxu0 %v2106_v3  ;;  %s1984_s29 = spop %1983 }
 0x291   : > { %1969 = vmatprep.subr.bf16.mxu0 %v2287_v0  ;;  %v1532_v55 = vstv %s1984_s29 }
 0x294   : > { %1970 = vmatpush3.bf16.msra.mxu0 %v2107_v4 }
 0x295   : > { %1971 = vmatprep.subr.bf16.mxu0 %v2287_v0 }
 0x298   : > { %1972 = vmatpush3.bf16.msra.mxu0 %v2108_v5 }
 0x299   : > { %1973 = vmatprep.subr.bf16.mxu0 %v2287_v0 }
 0x29c   : > { %1974 = vmatpush3.bf16.msra.mxu0 %v2109_v6 }
 0x29d   : > { %1975 = vmatprep.subr.bf16.mxu0 %v2287_v0 }
 0x2a0   : > { %1976 = vmatpush3.bf16.msra.mxu0 %v2110_v7 }
 0x2a1   : > { %1977 = vmatprep.subr.bf16.mxu0 %v2287_v0 }
 0x2a4   : > { %1978 = vmatpush3.bf16.msra.mxu0 %v2111_v8 }
 0x337   : > { %v986_v18 = vpop.f32.mrb[4].mxu0 }
 0x338   : > { %v1921_v19 = vpop.f32.mrb[5].mxu0  ;;  %v987_v21 = vadd.f32 %v1735_v17, %v986_v18 }
 0x339   : > { %v989_v20 = vpop.f32.mrb[6].mxu0 }
 0x33a   : > { %v990_v22 = vadd.f32 %v1735_v17, %v989_v20  ;;  %v1922_v23 = vpop.f32.mrb[7].mxu0 }
 0x33c   : > { %v1314_v24 = vpack.c.bf16 %v990_v22, %v987_v21 }
 0x33e   : > { %1980 = vmatmul.mubr.bf16.vlgmr.msra.gmra.mrb[12].mxu0 %v1314_v24 }
 0x35a   : > { %v1289_v26 = vpop.f32.mrb[8].mxu0 }
 0x35b   : > { %v1290_v0 = vadd.f32 %v1761_v25, %v1289_v26  ;;  %v1941_v27 = vpop.f32.mrb[9].mxu0 }
 0x35c   : > { %v1292_v28 = vpop.f32.mrb[10].mxu0 }
 0x35d   : > { %v1293_v29 = vadd.f32 %v1761_v25, %v1292_v28  ;;  %v1942_v30 = vpop.f32.mrb[11].mxu0  ;;  %v1296_v31 = vmax.f32 %v1290_v0, 0.0 }
 0x35f   : > { %v1297_v32 = vmax.f32 %v1293_v29, 0.0 }
 0x361   : > { %v1331_v33 = vpack.c.bf16 %v1297_v32, %v1296_v31 }
 0x363   : > { %1960 = vmatmul.mubr.bf16.vlgmr.msra.gmra.mrb[8].mxu1 %v1331_v33 }
 0x411   : > { %v1503_v35 = vpop.f32.mrb[12].mxu0 }
 0x412   : > { %v1981_v36 = vpop.f32.mrb[13].mxu0 }
 0x413   : > { %v1506_v37 = vpop.f32.mrb[14].mxu0 }
 0x414   : > { %v1982_v38 = vpop.f32.mrb[15].mxu0 }
 0x436   : > { %v1414_v40 = vpop.f32.mrb[8].mxu1 }
 0x437   : > { %v1504_v41 = vadd.f32 %v1503_v35, %v1414_v40  ;;  %v1961_v42 = vpop.f32.mrb[9].mxu1 }
 0x438   : > { %v1417_v43 = vpop.f32.mrb[10].mxu1 }
 0x439   : > { %v1514_v44 = vadd.f32 %v1786_v39, %v1504_v41  ;;  %v1507_v45 = vadd.f32 %v1506_v37, %v1417_v43  ;;  %v1962_v46 = vpop.f32.mrb[11].mxu1 }
 0x43b   : > { %v1515_v47 = vadd.f32 %v1786_v39, %v1507_v45  ;;  %vm1516_vm1 = vcmp.ge.f32.partialorder %v1514_v44, 0.0  ;;  %v1518_v49 = vmul.f32 0.01, %v1514_v44 }
 0x43d   : > { %v1520_v50 = vsel %vm1516_vm1, %v1514_v44, %v1518_v49  ;;  %vm1517_vm2 = vcmp.ge.f32.partialorder %v1515_v47, 0.0  ;;  %v1519_v51 = vmul.f32 0.01, %v1515_v47 }
 0x43e   : > { %v1526_v52 = vmul.f32 %v1787_v48, %v1520_v50 }
 0x43f   : > { %v1521_v53 = vsel %vm1517_vm2, %v1515_v47, %v1519_v51 }
 0x440   : > { %1528 = vadd.xlane.f32.xlu0 %v1526_v52  ;;  %v1527_v54 = vmul.f32 %v1787_v48, %v1521_v53 }
 0x444   : > { %1530 = vadd.xlane.f32.xlu0 %v1527_v54 }
 0x4cd   : > { %v1529_v56 = vpop.xlane.xlu0 %1528 }
 0x4ce   : > { %v1533_v57 = vadd.f32 %v1532_v55, %v1529_v56 }
 0x4d0   : > { %1536 = vst.msk [vmem:[%s566_s19] sm:$0xff] %vm1535_vm3, %v1533_v57 }
 0x4d1   : > { %v1531_v58 = vpop.xlane.xlu0 %1530 }
 0x4d2   : > { %v1534_v59 = vadd.f32 %v1532_v55, %v1531_v58 }
 0x4d4   : > { %1537 = vst.msk [vmem:[%s566_s19 + $0x8] sm:$0xff] %vm1535_vm3, %v1534_v59 }
 0x4d5 PF: > { %s25_s21 = sadd.s32 1, %s2278_s21  }
 0x4d6   : > { %p22_p3 = scmp.ge.s32.totalorder %s25_s21, 4  }
 0x4d8   :  { %24 = sbr.rel (!%p22_p3) target bundleno = 6 (0x6), region = 128 }
 0x4df   :  { %1560 = vsyncpa [#allocation3], 1 }
 0x4e0   :  { %1562 = vsyncpa [#allocation3 + $0x1], 1 }
 0x4e1   :  { %1563 = vsyncpa [#allocation5], 1 }
 0x4e2   :  { %1564 = vsyncpa [#allocation8], 1 }

</bundles_post_ra>
